<compile_context>
chip_gen: v6e
topology: v6e:2x2x1
jax: 0.10.0
libtpu: 0.0.40
codegen_flags: <defaults>
</compile_context>

<pallas_src>
import functools

import jax
import jax.numpy as jnp
from jax import lax
from jax.experimental import pallas as pl
from jax.experimental.pallas import tpu as pltpu


# ---------------------------------------------------------------------------
# Kernels
# ---------------------------------------------------------------------------

def _flip3d_kernel(x_ref, o_ref, *, flip_x, flip_y, swap_xy, sub):
    """Per-plane flip / transpose on a (p, H, W) block, streamed in sub-chunks."""
    p = x_ref.shape[0]

    def transform(x):
        if flip_y:
            x = jnp.flip(x, axis=1)      # reverse rows    (sublane permute)
        if flip_x:
            x = jnp.flip(x, axis=2)      # reverse columns (lane permute)
        if swap_xy:
            x = jnp.swapaxes(x, 1, 2)    # minor-dim transpose
        return x

    if sub and sub < p:
        nsub, rem = divmod(p, sub)
    else:
        nsub, rem = 0, p

    if nsub > 0:
        def body(q, carry):
            s = pl.multiple_of(q * sub, sub)
            o_ref[pl.ds(s, sub), :, :] = transform(x_ref[pl.ds(s, sub), :, :])
            return carry
        lax.fori_loop(0, nsub, body, 0)

    if rem > 0:
        s0 = nsub * sub                  # static tail offset / size
        o_ref[pl.ds(s0, rem), :, :] = transform(x_ref[pl.ds(s0, rem), :, :])


def _flip_flat_kernel(x_ref, o_ref):
    """flip_x & flip_y (no swap) == full reverse of the flattened plane."""
    # Lane-dense (p, H*W) block: one lane-axis reversal, unmasked stores.
    o_ref[...] = jnp.flip(x_ref[...], axis=-1)


# ---------------------------------------------------------------------------
# Wrapper
# ---------------------------------------------------------------------------

def _vmem_budget():
    """(block_bytes, vmem_limit_bytes) chosen per TPU generation."""
    try:
        vmem_phys = pltpu.get_tpu_info().vmem_capacity_bytes
    except Exception:
        vmem_phys = 64 * 1024 * 1024              # assume the smallest (v7x)
    if vmem_phys >= 128 * 1024 * 1024:            # v5e / v6e
        return 8 * 1024 * 1024, 64 * 1024 * 1024
    return 4 * 1024 * 1024, 32 * 1024 * 1024      # v7x / unknown


def _choose_planes(m, plane_bytes, block_bytes, sub_mult):
    """Planes per grid block."""
    p = max(1, block_bytes // max(1, plane_bytes))
    # Keep >= 2 grid steps whenever possible so v7x megacore uses both TCs.
    p = min(p, max(1, (m + 1) // 2))
    p = min(p, m)
    if p >= sub_mult:                 # sublane-aligned, uniform grid steps
        p = (p // sub_mult) * sub_mult
    return max(1, p)


def flip_dims(data, flip_x=False, flip_y=False, swap_xy=False, *,
              block_bytes=None):
    """Pallas implementation of FlipDims.forward for NCHW input."""
    n, c, h, w = data.shape

    # Identity: no HBM pass at all.
    if not (flip_x or flip_y or swap_xy):
        return data

    dtype = data.dtype
    itemsize = jnp.dtype(dtype).itemsize
    sub_mult = 8 * max(1, 4 // itemsize)          # f32:8  bf16:16  int8:32

    auto_block, vmem_limit = _vmem_budget()
    if block_bytes is None:
        block_bytes = auto_block

    m = n * c
    plane_bytes = h * w * itemsize
    out_hw = (w, h) if swap_xy else (h, w)

    compiler_params = pltpu.CompilerParams(
        dimension_semantics=("parallel",),
        vmem_limit_bytes=vmem_limit,
    )
    cost = pl.CostEstimate(flops=0, transcendentals=0,
                           bytes_accessed=2 * m * h * w * itemsize)

    # ---- Lane-dense fast path: both flips, no swap -------------------------
    if flip_x and flip_y and not swap_xy:
        L = h * w
        x = data.reshape(m, L)                    # free metadata reshape
        p = _choose_planes(m, plane_bytes, block_bytes, sub_mult)
        if p % sub_mult != 0:
            p = m        # full-extent block always satisfies the (8,128) rule
        out = pl.pallas_call(
            _flip_flat_kernel,
            out_shape=jax.ShapeDtypeStruct((m, L), dtype),
            grid_spec=pltpu.PrefetchScalarGridSpec(
                num_scalar_prefetch=0,
                grid=(pl.cdiv(m, p),),
                in_specs=[pl.BlockSpec((p, L), lambda i: (i, 0))],
                out_specs=pl.BlockSpec((p, L), lambda i: (i, 0)),
            ),
            compiler_params=compiler_params,
            cost_estimate=cost,
        )(x)
        return out.reshape(n, c, h, w)

    # ---- General path: (p, H, W) blocks, in-register flips / transpose -----
    x = data.reshape(m, h, w)
    p = _choose_planes(m, plane_bytes, block_bytes, sub_mult)

    # ~256 KiB sub-chunks inside the kernel to bound live values.
    sub = max(1, (256 * 1024) // max(1, plane_bytes))
    if sub >= 8:
        sub = (sub // 8) * 8
    sub = min(sub, p)

    kernel = functools.partial(_flip3d_kernel, flip_x=flip_x, flip_y=flip_y,
                               swap_xy=swap_xy, sub=sub)
    out = pl.pallas_call(
        kernel,
        out_shape=jax.ShapeDtypeStruct((m,) + out_hw, dtype),
        grid_spec=pltpu.PrefetchScalarGridSpec(
            num_scalar_prefetch=0,
            grid=(pl.cdiv(m, p),),
            in_specs=[pl.BlockSpec((p, h, w), lambda i: (i, 0, 0))],
            out_specs=pl.BlockSpec((p,) + out_hw, lambda i: (i, 0, 0)),
        ),
        compiler_params=compiler_params,
        cost_estimate=cost,
    )(x)
    return out.reshape((n, c) + out_hw)


# ---------------------------------------------------------------------------
# Reference + demo
# ---------------------------------------------------------------------------

def _reference(data, flip_x, flip_y, swap_xy):
    if flip_y:
        data = jnp.flip(data, axis=2)
    if flip_x:
        data = jnp.flip(data, axis=3)
    if swap_xy:
        data = jnp.swapaxes(data, 2, 3)
    return data


if __name__ == "__main__":
    key = jax.random.PRNGKey(0)
    x = jax.random.normal(key, (2, 4, 16, 16), dtype=jnp.float32)

    ok = True
    for fx in (False, True):
        for fy in (False, True):
            for sw in (False, True):
                out = jax.block_until_ready(
                    flip_dims(x, flip_x=fx, flip_y=fy, swap_xy=sw))
                ref = _reference(x, fx, fy, sw)
                if out.shape != ref.shape or not jnp.allclose(out, ref):
                    ok = False

    # Ragged multi-block grid coverage (m = 15 planes, forced tiny blocks).
    y = jax.random.normal(jax.random.PRNGKey(1), (3, 5, 16, 16), jnp.float32)
    for fx, fy, sw in ((False, True, False), (True, True, False),
                       (True, False, True)):
        out = jax.block_until_ready(
            flip_dims(y, flip_x=fx, flip_y=fy, swap_xy=sw, block_bytes=4096))
        ref = _reference(y, fx, fy, sw)
        if out.shape != ref.shape or not jnp.allclose(out, ref):
            ok = False

    if ok:
        print("KERNEL_OK")
</pallas_src>

<mosaic_0001>
module attributes {stable_mosaic.version = 11 : i64} {
  func.func @_flip3d_kernel(%arg0: i32, %arg1: memref<4x16x16xf32, #tpu.memory_space<vmem>>, %arg2: memref<4x16x16xf32, #tpu.memory_space<vmem>>) attributes {dimension_semantics = [#tpu.dimension_semantics<parallel>], iteration_bounds = array<i64: 2>, scalar_prefetch = 0 : i64, scratch_operands = 0 : i64, tpu.core_type = #tpu.core_type<tc>, window_params = [{transform_indices = @transform_0, window_bounds = array<i64: 4, 16, 16>}, {transform_indices = @transform_1, window_bounds = array<i64: 4, 16, 16>}]} {
    %c0 = arith.constant 0 : index
    %c0_0 = arith.constant 0 : index
    %c0_1 = arith.constant 0 : index
    %0 = vector.load %arg1[%c0, %c0_0, %c0_1] : memref<4x16x16xf32, #tpu.memory_space<vmem>>, vector<4x16x16xf32>
    %1 = tpu.transpose %0, [0, 2, 1] : vector<4x16x16xf32> -> vector<4x16x16xf32>
    %c0_2 = arith.constant 0 : index
    %c0_3 = arith.constant 0 : index
    %c0_4 = arith.constant 0 : index
    %2 = vector.load %arg2[%c0_2, %c0_3, %c0_4] : memref<4x16x16xf32, #tpu.memory_space<vmem>>, vector<4x16x16xf32>
    tpu.vector_store %arg2[%c0_2, %c0_3, %c0_4], %1 {strides = array<i32>} : memref<4x16x16xf32, #tpu.memory_space<vmem>>, vector<4x16x16xf32>,
    return
  }
  func.func @transform_0(%arg0: i32) -> (i32, i32, i32) {
    %c0_i32 = arith.constant 0 : i32
    %c0_i32_0 = arith.constant 0 : i32
    %c0_i32_1 = arith.constant 0 : i32
    return %arg0, %c0_i32, %c0_i32_0 : i32, i32, i32
  }
  func.func @transform_1(%arg0: i32) -> (i32, i32, i32) {
    %c0_i32 = arith.constant 0 : i32
    %c0_i32_0 = arith.constant 0 : i32
    %c0_i32_1 = arith.constant 0 : i32
    return %arg0, %c0_i32, %c0_i32_0 : i32, i32, i32
  }
}

</mosaic_0001>

<bundles_post_ra>
// kernel: tpu_custom_call.1
= control target key start
LH: loop header
LB: loop body
LE: loop exit
PB: predicated region body
PF: predicated region fallthrough
CT: control target
= control target key end

     0   :  { %6 = vsyncpa [#allocation3], 0  ;;  %s714_s0 = inlined_call_operand.hbm [shape: f32[8,16,16], index: 0, kind: input, shape index: {}]   ;;  %s715_s1 = inlined_call_operand.hbm [shape: f32[8,16,16], index: 1, kind: output, shape index: {}]  }
   0x1   :  { %8 = vsyncpa [#allocation3 + $0x1], 0 }
   0x2   :  { %9 = vsyncpa [#allocation4], 0 }
   0x3   :  { %11 = vsyncpa [#allocation4 + $0x1], 0  ;;  %s552_s6 = smov 0   ;;  %s554_s7 = smov 0  }
   0x4   :  { %s556_s8 = smov 0   ;;  %s558_s9 = smov 0  }
   0x5 LB: > { %s573_s10 = sadd.s32 4294967295, %s534_s9   ;;  %s371_s11 = sadd.s32 4294967294, %s534_s9   ;;  %s534_s9 = sphi %s558_s9, %s730_s9   ;;  %s530_s8 = sphi %s556_s8, %s729_s8   ;;  %s526_s7 = sphi %s554_s7, %s728_s7   ;;  %s522_s6 = sphi %s552_s6, %s727_s6  }
   0x6   : > { %s577_s12 = sadd.s32 1, %s534_s9   ;;  %s24_s13 = sadd.s32 1, %s530_s8 }
   0x7   : > { %s21_s14 = ssub.s32 %s534_s9, %s577_s12  ;;  %p31_p0 = scmp.ne.s32.totalorder %s530_s8, %s526_s7 }
   0x8   : > { %p22_p1 = scmp.eq.s32.totalorder %s21_s14, 0  ;;  %p32_p2 = scmp.eq.s32.totalorder %s534_s9, 0 }
   0x9   : > { %p37_p3 = scmp.ne.s32.totalorder %s526_s7, %s522_s6  ;;  %p38_p4 = scmp.eq.s32.totalorder %s573_s10, 0 }
   0xa   : > { %s589_s15 = scalar_select %p22_p1, %s530_s8, %s24_s13  }
   0xb   : > { %p591_p5 = por %p32_p2, %p31_p0  ;;  %p595_p6 = por %p38_p4, %p37_p3 }
   0xc   : > { %p61_p7 = scmp.eq.s32.totalorder %s573_s10, 1  ;;  %p67_p8 = scmp.eq.s32.totalorder %s371_s11, 1 }
   0xd   : > { %s719_s17 = scalar_select %p595_p6, 1, 0 }
   0xe   : > { %p403_p10 = scmp.lt.s32.totalorder %s534_s9, 2  ;;  %p602_p11 = por %p61_p7, %p31_p0 }
   0xf   : > { %p606_p12 = por %p67_p8, %p37_p3  ;;  %s87_s20 = sand.u32 1, %s530_s8  }
  0x10   : > { %s720_s18 = scalar_select %p602_p11, 1, 0 }
  0x11   : > { %s721_s19 = scalar_select %p606_p12, 1, 0 }
  0x12   : > { %s388_s21 = sshll.u32 %s534_s9, 10  ;;  %s374_s22 = sshll.u32 %s87_s20, 6 }
  0x13   : > { %s615_s25 = scalar_lea.hbm %s714_s0, %s388_s21  ;;  %s91_s26 = scalar_lea.vmem [#allocation2], %s374_s22 }
  0x14   : > { %s99_s27 = sshll.u32 %s91_s26, 4  ;;  %p619_p13 = pnand %p403_p10, %p591_p5  ;;  %s623_s27 = int_to_ptr.vmem [resolvable:$true] %s99_s27 }
  0x15   : > { %s625_s29 = scalar_lea.sflag [#allocation3], %s87_s20  ;;  %s442_s30 = scalar_lea.hbm %s615_s25, 1024 }
  0x16   : > { %p443_p0 = scmp.ne.s32.totalorder %s615_s25, %s442_s30  ;;  %p444_p1 = pneg %p619_p13 }
  0x17   : > { %s447_s4 = scalar_lea.hbm %s714_s0, 2048  ;;  %p448_p4 = scmp.lt.s32.totalorder %s615_s25, %s714_s0 }
  0x18   : > { %p445_p2 = pnand %p444_p1, %p443_p0  ;;  %p449_p5 = scmp.lt.s32.totalorder %s447_s4, %s442_s30 }
  0x1a   : > { %p446_p3 = pneg %p445_p2  ;;  %p450_p7 = por %p449_p5, %p448_p4 }
  0x1c   : > { %p451_p8 = pnand %p450_p7, %p446_p3 }
  0x1e   : > { %454 = shalt.err (!%p451_p8)
}
  0x1f   : > { %s455_s13 = scalar_lea.vmem %s623_s27, 1024  ;;  %s536_s14 = smov [#allocation2]  }
  0x20   : > { %p456_p10 = scmp.ne.s32.totalorder %s623_s27, %s455_s13  ;;  %s460_s16 = sshll.u32 %s536_s14, 4  ;;  %s461_s16 = int_to_ptr.vmem [resolvable:$false] %s460_s16 }
  0x21   : > { %s462_s20 = scalar_lea.vmem %s461_s16, 2048  ;;  %p463_p2 = scmp.lt.s32.totalorder %s623_s27, %s461_s16 }
  0x22   : > { %p458_p9 = pnand %p456_p10, %p444_p1  ;;  %p464_p12 = scmp.lt.s32.totalorder %s462_s20, %s455_s13 }
  0x24   : > { %p459_p0 = pneg %p458_p9  ;;  %p465_p11 = por %p464_p12, %p463_p2 }
  0x26   : > { %p466_p6 = pnand %p465_p11, %p459_p0 }
  0x28   : > { %469 = shalt.err (!%p466_p6)
}
  0x29   : > { %s537_s21 = smov 128   ;;  %s538_s22 = smov 8  }
  0x2a   : > { %398 = dma.hbm_to_vmem [thread:$0]  (!%p619_p13), %s615_s25, 1024, %s623_s27, %s625_s29, %s537_s21, %s537_s21, %s538_s22  }
  0x2b   : > { %p378_p9 = scmp.ge.s32.totalorder %s534_s9, 1  ;;  %p107_p1 = scmp.lt.s32.totalorder %s534_s9, 3 }
  0x2d   : > { %p108_p3 = pnand %p378_p9, %p107_p1 }
  0x2e   : > { %s649_s23 = sand.u32 (!%p108_p3), 1, %s526_s7   ;;  %p723_p6 = scmp.ne.s32.totalorder (!%p108_p3), %s719_s17, 0 }
  0x2f   : > { %111 = sbr.rel (%p108_p3) target bundleno = 205 (0xcd), region = 24  ;;  %s379_s24 = sshll.u32 (!%p108_p3), %s649_s23, 6 }
  0x30   : > { %s114_s26 = scalar_lea.sflag (!%p108_p3), [#allocation3], %s649_s23  ;;  %s117_s30 = scalar_lea.vmem (!%p108_p3), [#allocation2], %s379_s24 }
  0x34   : > { %513 = dma.done.wait (%p723_p6), %s114_s26, 1024  }
  0x35   : > { %515 = vsyncadd (%p723_p6), %s114_s26, 4294966272  ;;  %v140_v0 = vld [vmem:[%s117_s30 + $0x10] sm:$0xff]  ;;  %v138_v1 = vld [vmem:[%s117_s30] sm:$0xff]  ;;  %vm274_vm0 = vcmask 130048   ;;  %s135_s17 = scalar_lea.vmem [#allocation5], %s379_s24  ;;  %s390_s27 = sshll.u32 %s573_s10, 10 }
  0x36   : > { %178 = vxpose.xlu1.b32.start [1/2] (short) (narrow) %v140_v0, 16  ;;  %146 = vxpose.xlu0.b32.start [1/2] (short) (narrow) %v138_v1, 16  ;;  %v141_v2 = vld [vmem:[%s117_s30 + $0x18] sm:$0xff]  ;;  %v139_v3 = vld [vmem:[%s117_s30 + $0x8] sm:$0xff]  ;;  %v144_v4 = vld [vmem:[%s117_s30 + $0x30] sm:$0xff]  ;;  %s298_s25 = sshll.u32 %s135_s17, 4  ;;  %s669_s2 = scalar_lea.hbm %s715_s1, %s390_s27  ;;  %s662_s25 = int_to_ptr.vmem [resolvable:$true] %s298_s25 }
  0x37   : > { %v142_v5 = vld [vmem:[%s117_s30 + $0x20] sm:$0xff]  ;;  %v145_v6 = vld [vmem:[%s117_s30 + $0x38] sm:$0xff]  ;;  %v143_v7 = vld [vmem:[%s117_s30 + $0x28] sm:$0xff]  ;;  %s284_s10 = scalar_lea.sflag [#allocation4], %s649_s23  ;;  %s470_s3 = scalar_lea.vmem %s662_s25, 1024 }
  0x38   : > { %p471_p11 = scmp.ne.s32.totalorder %s662_s25, %s470_s3  ;;  %p724_p12 = scmp.ne.s32.totalorder %s720_s18, 0 }
  0x39   : > { %s539_s4 = smov [#allocation5]  }
  0x3a   : > { %179 = vxpose.xlu1.b32.end [2/2] (short) (narrow) %v141_v2, 16  ;;  %147 = vxpose.xlu0.b32.end [2/2] (short) (narrow) %v139_v3, 16  ;;  %p472_p13 = pnand %p471_p11, %p724_p12  ;;  %s474_s5 = sshll.u32 %s539_s4, 4  ;;  %s475_s5 = int_to_ptr.vmem [resolvable:$false] %s474_s5 }
  0x3b   : > { %s476_s11 = scalar_lea.vmem %s475_s5, 2048  ;;  %p477_p5 = scmp.lt.s32.totalorder %s662_s25, %s475_s5 }
  0x3c   : > { %p473_p4 = pneg %p472_p13  ;;  %p478_p7 = scmp.lt.s32.totalorder %s476_s11, %s470_s3 }
  0x3e   : > { %242 = vxpose.xlu1.b32.start [1/2] (short) (narrow) %v144_v4, 16  ;;  %210 = vxpose.xlu0.b32.start [1/2] (short) (narrow) %v142_v5, 16  ;;  %p479_p8 = por %p478_p7, %p477_p5 }
  0x40   : > { %p480_p10 = pnand %p479_p8, %p473_p4 }
  0x42   : > { %243 = vxpose.xlu1.b32.end [2/2] (short) (narrow) %v145_v6, 16  ;;  %211 = vxpose.xlu0.b32.end [2/2] (short) (narrow) %v143_v7, 16 }
  0xb2   : > { %v194_v8 = vpop.trf.xlu1  ;;  %v162_v9 = vpop.trf.xlu0 }
  0xb3   : > { %277 = vst.msk [vmem:[%s135_s17 + $0x10] sm:$0xff] %vm274_vm0, %v194_v8  ;;  %275 = vst.msk [vmem:[%s135_s17] sm:$0xff] %vm274_vm0, %v162_v9 }
  0xb6   : > { %v195_v10 = vpop.trf.xlu1  ;;  %v163_v11 = vpop.trf.xlu0 }
  0xb7   : > { %278 = vst.msk [vmem:[%s135_s17 + $0x18] sm:$0xff] %vm274_vm0, %v195_v10  ;;  %276 = vst.msk [vmem:[%s135_s17 + $0x8] sm:$0xff] %vm274_vm0, %v163_v11 }
  0xba   : > { %v258_v12 = vpop.trf.xlu1  ;;  %v226_v13 = vpop.trf.xlu0 }
  0xbb   : > { %281 = vst.msk [vmem:[%s135_s17 + $0x30] sm:$0xff] %vm274_vm0, %v258_v12  ;;  %279 = vst.msk [vmem:[%s135_s17 + $0x20] sm:$0xff] %vm274_vm0, %v226_v13 }
  0xbe   : > { %v259_v14 = vpop.trf.xlu1  ;;  %v227_v15 = vpop.trf.xlu0 }
  0xbf   : > { %282 = vst.msk [vmem:[%s135_s17 + $0x38] sm:$0xff] %vm274_vm0, %v259_v14  ;;  %280 = vst.msk [vmem:[%s135_s17 + $0x28] sm:$0xff] %vm274_vm0, %v227_v15 }
  0xc0   : > { %483 = shalt.err (!%p480_p10)
}
  0xc1   : > { %s484_s13 = scalar_lea.hbm %s669_s2, 1024  ;;  %s488_s20 = scalar_lea.hbm %s715_s1, 2048 }
  0xc2   : > { %p485_p0 = scmp.ne.s32.totalorder %s669_s2, %s484_s13  ;;  %p489_p1 = scmp.lt.s32.totalorder %s669_s2, %s715_s1 }
  0xc3   : > { %p490_p3 = scmp.lt.s32.totalorder %s488_s20, %s484_s13 }
  0xc4   : > { %p486_p2 = pnand %p485_p0, %p724_p12 }
  0xc5   : > { %p491_p6 = por %p490_p3, %p489_p1 }
  0xc6   : > { %p487_p9 = pneg %p486_p2 }
  0xc8   : > { %p492_p11 = pnand %p491_p6, %p487_p9 }
  0xca   : > { %495 = shalt.err (!%p492_p11)
}
  0xcb   : > { %s540_s24 = smov 128   ;;  %s541_s26 = smov 8  }
  0xcc   : > { %393 = dma.vmem_to_hbm [thread:$0]  (%p724_p12), %s662_s25, 1024, %s669_s2, %s284_s10, %s540_s24, %s540_s24, %s541_s26  }
  0xcd PF: > { %s313_s30 = sand.u32 1, %s522_s6   ;;  %p725_p13 = scmp.ne.s32.totalorder %s721_s19, 0 }
  0xce   : > { %p726_p4 = scmp.ge.s32.totalorder %s534_s9, 2  ;;  %s314_s17 = scalar_lea.sflag [#allocation4], %s313_s30 }
  0xd0   : > { %p400_p5 = pnand %p726_p4, %p725_p13 }
  0xd2   : > { %p401_p7 = pneg %p400_p5 }
  0xd4   : > { %517 = dma.done.wait (%p401_p7), %s314_s17, 1024  }
  0xd5   : > { %519 = vsyncadd (%p401_p7), %s314_s17, 4294966272  ;;  %p14_p8 = scmp.ge.s32.totalorder %s577_s12, 4   ;;  %s727_s6 = smov %s526_s7 }
  0xd6   : > { %s728_s7 = smov %s530_s8  ;;  %s729_s8 = smov %s589_s15 }
  0xd7   : > { %s730_s9 = smov %s577_s12  ;;  %16 = sbr.rel (!%p14_p8) target bundleno = 5 (0x5), region = 69 }
  0xdc   :  { %319 = vsyncpa [#allocation3], 1 }
  0xdd   :  { %321 = vsyncpa [#allocation3 + $0x1], 1 }
  0xde   :  { %322 = vsyncpa [#allocation4], 1 }
  0xdf   :  { %324 = vsyncpa [#allocation4 + $0x1], 1 }

</bundles_post_ra>
